<compile_context>
chip_gen: v5e
topology: v5e:2x2
jax: 0.10.0
libtpu: 0.0.40
codegen_flags: <defaults>
</compile_context>

<pallas_src>
import functools

import jax
import jax.numpy as jnp
from jax.experimental import pallas as pl
from jax.experimental.pallas import tpu as pltpu

# config.CUTOFF_RADIUS is not provided in the prompt; use a deterministic
# default typical for molecular GNNs.
CUTOFF_RADIUS = 5.0
NUM_GAUSSIANS = 50
START = 0.0


def _gaussian_kernel(scale, start, step, g, dist_ref, out_ref):
    # dist_ref: (TILE_N, 1) f32,  out_ref: (TILE_N, G) out_dtype
    # Offsets are regenerated in-kernel (one tiny vreg of work per grid step)
    # instead of being streamed from HBM:  offset[j] = start + step*j,
    # pre-scaled by scale = sqrt(-gamma) so the body is exp(-(d*d)).
    idx = jax.lax.broadcasted_iota(jnp.int32, (1, g), 1).astype(jnp.float32)
    off_scaled = (start + step * idx) * scale            # (1, G)
    d = dist_ref[...] * scale - off_scaled               # broadcast -> (TILE_N, G)
    out_ref[...] = jnp.exp(-(d * d)).astype(out_ref.dtype)


class GaussianFilter:
    """JAX/Pallas port of the PyTorch GaussianFilter module."""

    def __init__(self, start=START, stop=CUTOFF_RADIUS, num_gaussians=NUM_GAUSSIANS):
        assert num_gaussians >= 2, "num_gaussians must be >= 2"
        self.start = float(start)
        # Pure-python step: identical (to ~1 ulp) to offset[1]-offset[0] but
        # avoids a device->host sync at construction time.
        self.step = (float(stop) - self.start) / (num_gaussians - 1)
        self.gamma = -0.5 / self.step ** 2
        self.scale = (0.5 ** 0.5) / self.step            # sqrt(-gamma)
        self.num_gaussians = num_gaussians
        # Kept for reference / parity with register_buffer('offset', ...).
        self.offset = jnp.linspace(start, stop, num_gaussians, dtype=jnp.float32)

    def __call__(self, dist, tile_n=2048, out_dtype=jnp.float32):
        dist = jnp.asarray(dist, dtype=jnp.float32)
        n = int(dist.size)
        g = self.num_gaussians

        # Big tiles amortize the per-grid-step pipeline overhead, but keep the
        # grid length >= 2 (both v7x TensorCores busy) and sublane-aligned.
        half_n = ((n + 1) // 2 + 7) // 8 * 8
        tile = max(8, min(int(tile_n), half_n))
        n_pad = ((n + tile - 1) // tile) * tile

        dist_flat = jnp.reshape(dist, (-1, 1))
        if n_pad != n:
            dist_flat = jnp.pad(dist_flat, ((0, n_pad - n), (0, 0)))

        kernel = functools.partial(
            _gaussian_kernel, self.scale, self.start, self.step, g
        )

        # VMEM budget: dist (tile,1) and out (tile,G) both lane-pad to 128,
        # double-buffered, worst-case f32  ->  2 bufs * 2 arrays * tile*128*4 B.
        vmem_need = 2 * 2 * tile * 128 * 4
        cp_kwargs = {"dimension_semantics": ("parallel",)}
        if vmem_need > (12 << 20):
            cp_kwargs["vmem_limit_bytes"] = min(vmem_need * 3 // 2, 48 << 20)

        out = pl.pallas_call(
            kernel,
            out_shape=jax.ShapeDtypeStruct((n_pad, g), out_dtype),
            grid=(n_pad // tile,),
            in_specs=[pl.BlockSpec((tile, 1), lambda i: (i, 0))],
            out_specs=pl.BlockSpec((tile, g), lambda i: (i, 0)),
            compiler_params=pltpu.CompilerParams(**cp_kwargs),
        )(dist_flat)

        return out[:n]                                    # (N, G)


def _reference(dist, offset, gamma):
    d = jnp.reshape(dist, (-1, 1)) - jnp.reshape(offset, (1, -1))
    return jnp.exp(gamma * d * d)


if __name__ == "__main__":
    key = jax.random.PRNGKey(0)
    # e.g. pairwise distances for a small batch of edges: (2, 4, 16) -> N=128
    dist = jax.random.uniform(key, (2, 4, 16), dtype=jnp.float32,
                              minval=0.0, maxval=CUTOFF_RADIUS)

    gf = GaussianFilter()
    out = jax.block_until_ready(gf(dist))

    ref = _reference(dist.astype(jnp.float32), gf.offset, gf.gamma)
    assert out.shape == (dist.size, NUM_GAUSSIANS), out.shape
    assert jnp.allclose(out, ref, atol=1e-5, rtol=1e-5), "mismatch vs reference"

    print("KERNEL_OK")
</pallas_src>

<mosaic_0001>
module attributes {stable_mosaic.version = 11 : i64} {
  func.func @_gaussian_kernel(%arg0: i32, %arg1: memref<64x1xf32, #tpu.memory_space<vmem>>, %arg2: memref<64x50xf32, #tpu.memory_space<vmem>>) attributes {dimension_semantics = [#tpu.dimension_semantics<parallel>], iteration_bounds = array<i64: 2>, scalar_prefetch = 0 : i64, scratch_operands = 0 : i64, tpu.core_type = #tpu.core_type<tc>, window_params = [{transform_indices = @transform_0, window_bounds = array<i64: 64, 1>}, {transform_indices = @transform_1, window_bounds = array<i64: 64, 50>}]} {
    %0 = tpu.iota {dimensions = array<i32: 1>} : vector<1x50xi32>
    %1 = arith.sitofp %0 : vector<1x50xi32> to vector<1x50xf32>
    %cst = arith.constant 0.10204082 : f32
    %2 = vector.broadcast %cst : f32 to vector<1x50xf32>
    %3 = arith.mulf %2, %1 : vector<1x50xf32>
    %cst_0 = arith.constant 0.000000e+00 : f32
    %4 = vector.broadcast %cst_0 : f32 to vector<1x50xf32>
    %5 = arith.addf %4, %3 : vector<1x50xf32>
    %cst_1 = arith.constant 6.92964649 : f32
    %6 = vector.broadcast %cst_1 : f32 to vector<1x50xf32>
    %7 = arith.mulf %5, %6 : vector<1x50xf32>
    %c0 = arith.constant 0 : index
    %c0_2 = arith.constant 0 : index
    %8 = vector.load %arg1[%c0, %c0_2] : memref<64x1xf32, #tpu.memory_space<vmem>>, vector<64x1xf32>
    %cst_3 = arith.constant 6.92964649 : f32
    %9 = vector.broadcast %cst_3 : f32 to vector<64x1xf32>
    %10 = arith.mulf %8, %9 : vector<64x1xf32>
    %11 = vector.broadcast %10 : vector<64x1xf32> to vector<64x50xf32>
    %12 = vector.broadcast %7 : vector<1x50xf32> to vector<64x50xf32>
    %13 = arith.subf %11, %12 : vector<64x50xf32>
    %14 = arith.mulf %13, %13 : vector<64x50xf32>
    %cst_4 = arith.constant 0.000000e+00 : f32
    %15 = vector.broadcast %cst_4 : f32 to vector<64x50xf32>
    %16 = arith.subf %15, %14 : vector<64x50xf32>
    %17 = math.exp %16 : vector<64x50xf32>
    %c0_5 = arith.constant 0 : index
    %c0_6 = arith.constant 0 : index
    %18 = vector.load %arg2[%c0_5, %c0_6] : memref<64x50xf32, #tpu.memory_space<vmem>>, vector<64x50xf32>
    tpu.vector_store %arg2[%c0_5, %c0_6], %17 {strides = array<i32>} : memref<64x50xf32, #tpu.memory_space<vmem>>, vector<64x50xf32>,
    return
  }
  func.func @transform_0(%arg0: i32) -> (i32, i32) {
    %c0_i32 = arith.constant 0 : i32
    %c0_i32_0 = arith.constant 0 : i32
    return %arg0, %c0_i32 : i32, i32
  }
  func.func @transform_1(%arg0: i32) -> (i32, i32) {
    %c0_i32 = arith.constant 0 : i32
    %c0_i32_0 = arith.constant 0 : i32
    return %arg0, %c0_i32 : i32, i32
  }
}

</mosaic_0001>

<bundles_post_ra>
// kernel: tpu_custom_call.1
= control target key start
LH: loop header
LB: loop body
LE: loop exit
PB: predicated region body
PF: predicated region fallthrough
CT: control target
= control target key end

     0   :  { %s345_s6 = smov 0   ;;  %s387_s0 = inlined_call_operand.vmem [shape: f32[128,1], index: 0, kind: input, shape index: {}]   ;;  %s388_s1 = inlined_call_operand.vmem [shape: f32[128,50], index: 1, kind: output, shape index: {}]  }
   0x1 LB: > { %s287_s7 = sadd.s32 4294967295, %s332_s6   ;;  %p291_p0 = scmp.ge.s32.totalorder %s332_s6, 1  ;;  %s332_s6 = sphi %s345_s6, %s11_s6  }
   0x2   : > { %p88_p1 = scmp.lt.s32.totalorder %s332_s6, 3 }
   0x4   : > { %p89_p2 = pnand %p291_p0, %p88_p1 }
   0x5   : > { %s292_s8 = sshll.u32 (!%p89_p2), %s287_s7, 3 }
   0x6   : > { %92 = sbr.rel (%p89_p2) target bundleno = 165 (0xa5), region = 24  ;;  %p109_p3 = scmp.lt.s32.totalorder (!%p89_p2), %s292_s8, 15 }
   0xb   : > { %v334_v0 = vmov 0   ;;  %s390_s8 = smov (!%p109_p3, %s292_s8), 15  ;;  %v120_v17 = vlaneseq  ;;  %vm222_vm0 = vcmask 408576  }
   0xc   : > { %308 = vset.pattern.permute.xlu1 %v334_v0  ;;  %307 = vset.pattern.permute.xlu0 %v334_v0  ;;  %s293_s9 = sshll.u32 %s390_s8, 3 }
   0xd   : > { %309 = vset.pattern.permute.xlu2 %v334_v0  ;;  %s112_s12 = scalar_lea.vmem %s387_s0, %s293_s9  ;;  %v121_v18 = vand.u32 127, %v120_v17  ;;  %s366_s15 = scalar_lea.vmem %s388_s1, %s293_s9 }
   0xe   : > { %v128_v1 = vld [vmem:[%s112_s12 + $0x10] sm:$0xff]  ;;  %v126_v2 = vld [vmem:[%s112_s12] sm:$0xff]  ;;  %v129_v5 = vld [vmem:[%s112_s12 + $0x18] sm:$0xff] }
   0xf   : > { %v136_v3 = vmul.f32 6.9296465, %v128_v1  ;;  %v134_v4 = vmul.f32 6.9296465, %v126_v2  ;;  %v127_v6 = vld [vmem:[%s112_s12 + $0x8] sm:$0xff]  ;;  %v130_v7 = vld [vmem:[%s112_s12 + $0x20] sm:$0xff]  ;;  %v122_v19 = vcvt.s32.f32 %v121_v18 }
  0x10   : > { %v138_v8 = vmul.f32 6.9296465, %v130_v7  ;;  %v137_v9 = vmul.f32 6.9296465, %v129_v5  ;;  %v135_v10 = vmul.f32 6.9296465, %v127_v6 }
  0x11   : > { %154 = vperm.xlu1 %308, %v136_v3   ;;  %144 = vperm.xlu0 %307, %v134_v4   ;;  %v131_v11 = vld [vmem:[%s112_s12 + $0x28] sm:$0xff]  ;;  %v133_v13 = vld [vmem:[%s112_s12 + $0x38] sm:$0xff]  ;;  %v132_v14 = vld [vmem:[%s112_s12 + $0x30] sm:$0xff]  ;;  %v123_v20 = vmul.f32 0.10204082, %v122_v19 }
  0x12   : > { %164 = vperm.xlu2 %309, %v138_v8   ;;  %v139_v12 = vmul.f32 6.9296465, %v131_v11  ;;  %v141_v15 = vmul.f32 6.9296465, %v133_v13  ;;  %v140_v16 = vmul.f32 6.9296465, %v132_v14 }
  0x13   : > { %v125_v21 = vmul.f32 6.9296465, %v123_v20 }
  0x19   : > { %159 = vperm.xlu1 %308, %v137_v9   ;;  %149 = vperm.xlu0 %307, %v135_v10  }
  0x1a   : > { %169 = vperm.xlu2 %309, %v139_v12  }
  0x21   : > { %179 = vperm.xlu1 %308, %v141_v15   ;;  %174 = vperm.xlu0 %307, %v140_v16  }
  0x6c   : > { %v165_v22 = vpop.permute.xlu2 %164 }
  0x6d   : > { %v186_v23 = vsub.f32 %v165_v22, %v125_v21 }
  0x6f   : > { %v194_v24 = vmul.f32 %v186_v23, %v186_v23 }
  0x71   : > { %v202_v25 = vsub.f32 0.0, %v194_v24 }
  0x73   : > { %v214_v26 = vmul.f32 1.442695, %v202_v25 }
  0x74   : > { %v170_v27 = vpop.permute.xlu2 %169 }
  0x75   : > { %310 = vpow2.f32 %v214_v26  ;;  %v187_v28 = vsub.f32 %v170_v27, %v125_v21 }
  0x77   : > { %v195_v29 = vmul.f32 %v187_v28, %v187_v28 }
  0x79   : > { %v203_v30 = vsub.f32 0.0, %v195_v29 }
  0x7b   : > { %v311_v31 = vpop.eup %310  ;;  %v216_v32 = vmul.f32 1.442695, %v203_v30 }
  0x7c   : > { %227 = vst.msk [vmem:[%s366_s15 + $0x20] sm:$0xff] %vm222_vm0, %v311_v31 }
  0x7d   : > { %312 = vpow2.f32 %v216_v32 }
  0x83   : > { %v155_v33 = vpop.permute.xlu1 %154  ;;  %v145_v34 = vpop.permute.xlu0 %144 }
  0x84   : > { %v184_v35 = vsub.f32 %v155_v33, %v125_v21  ;;  %v182_v36 = vsub.f32 %v145_v34, %v125_v21  ;;  %v313_v37 = vpop.eup %312 }
  0x85   : > { %228 = vst.msk [vmem:[%s366_s15 + $0x28] sm:$0xff] %vm222_vm0, %v313_v37 }
  0x86   : > { %v192_v38 = vmul.f32 %v184_v35, %v184_v35  ;;  %v190_v39 = vmul.f32 %v182_v36, %v182_v36 }
  0x88   : > { %v200_v40 = vsub.f32 0.0, %v192_v38  ;;  %v198_v41 = vsub.f32 0.0, %v190_v39 }
  0x8a   : > { %v210_v42 = vmul.f32 1.442695, %v200_v40  ;;  %v206_v43 = vmul.f32 1.442695, %v198_v41 }
  0x8b   : > { %v160_v44 = vpop.permute.xlu1 %159  ;;  %v150_v45 = vpop.permute.xlu0 %149 }
  0x8c   : > { %314 = vpow2.f32 %v210_v42  ;;  %v185_v46 = vsub.f32 %v160_v44, %v125_v21  ;;  %v183_v47 = vsub.f32 %v150_v45, %v125_v21 }
  0x8d   : > { %316 = vpow2.f32 %v206_v43 }
  0x8e   : > { %v193_v48 = vmul.f32 %v185_v46, %v185_v46  ;;  %v191_v49 = vmul.f32 %v183_v47, %v183_v47 }
  0x90   : > { %v201_v50 = vsub.f32 0.0, %v193_v48  ;;  %v199_v51 = vsub.f32 0.0, %v191_v49 }
  0x92   : > { %v315_v52 = vpop.eup %314  ;;  %v212_v53 = vmul.f32 1.442695, %v201_v50  ;;  %v208_v54 = vmul.f32 1.442695, %v199_v51 }
  0x93   : > { %v317_v55 = vpop.eup %316  ;;  %225 = vst.msk [vmem:[%s366_s15 + $0x10] sm:$0xff] %vm222_vm0, %v315_v52  ;;  %v180_v56 = vpop.permute.xlu1 %179 }
  0x94   : > { %v175_v57 = vpop.permute.xlu0 %174  ;;  %223 = vst.msk [vmem:[%s366_s15] sm:$0xff] %vm222_vm0, %v317_v55  ;;  %318 = vpow2.f32 %v212_v53  ;;  %v189_v58 = vsub.f32 %v180_v56, %v125_v21 }
  0x95   : > { %v188_v59 = vsub.f32 %v175_v57, %v125_v21  ;;  %320 = vpow2.f32 %v208_v54 }
  0x96   : > { %v197_v60 = vmul.f32 %v189_v58, %v189_v58 }
  0x97   : > { %v196_v61 = vmul.f32 %v188_v59, %v188_v59 }
  0x98   : > { %v205_v62 = vsub.f32 0.0, %v197_v60 }
  0x99   : > { %v204_v63 = vsub.f32 0.0, %v196_v61 }
  0x9a   : > { %v319_v0 = vpop.eup %318  ;;  %v220_v1 = vmul.f32 1.442695, %v205_v62 }
  0x9b   : > { %v218_v2 = vmul.f32 1.442695, %v204_v63  ;;  %v321_v3 = vpop.eup %320  ;;  %226 = vst.msk [vmem:[%s366_s15 + $0x18] sm:$0xff] %vm222_vm0, %v319_v0 }
  0x9c   : > { %224 = vst.msk [vmem:[%s366_s15 + $0x8] sm:$0xff] %vm222_vm0, %v321_v3  ;;  %322 = vpow2.f32 %v220_v1 }
  0x9d   : > { %324 = vpow2.f32 %v218_v2 }
  0xa2   : > { %v323_v4 = vpop.eup %322 }
  0xa3   : > { %v325_v5 = vpop.eup %324  ;;  %230 = vst.msk [vmem:[%s366_s15 + $0x38] sm:$0xff] %vm222_vm0, %v323_v4 }
  0xa4   : > { %229 = vst.msk [vmem:[%s366_s15 + $0x30] sm:$0xff] %vm222_vm0, %v325_v5 }
  0xa5 PF: > { %s11_s6 = sadd.s32 1, %s332_s6  }
  0xa6   : > { %p8_p4 = scmp.ge.s32.totalorder %s11_s6, 4  }
  0xa8   :  { %10 = sbr.rel (!%p8_p4) target bundleno = 1 (0x1), region = 54 }

</bundles_post_ra>
